<compile_context>
chip_gen: v5e
topology: v5e:2x2
jax: 0.10.0
libtpu: 0.0.40
codegen_flags: <defaults>
</compile_context>

<pallas_src>
import jax
import jax.numpy as jnp
from jax.experimental import pallas as pl
from jax.experimental.pallas import tpu as pltpu


def ncf_kernel(uid_ref, iid_ref,
               ut_mlp_ref, it_mlp_ref, ut_mf_ref, it_mf_ref,
               w1u_ref, w1i_ref, b1_ref, w2_ref, b2_ref,
               wa_mlp_ref, wa_mf_ref, ba_ref,
               out_ref):
    block_b = uid_ref.shape[1]
    n_users = ut_mlp_ref.shape[1]
    n_items = it_mlp_ref.shape[1]

    uid = uid_ref[...]                                   # (1, block_b) int32
    iid = iid_ref[...]                                   # (1, block_b) int32

    # Fused embedding gather via one-hot matmul (MXU); output is feature-major.
    u_onehot = (jax.lax.broadcasted_iota(jnp.int32, (n_users, block_b), 0)
                == uid).astype(jnp.float32)              # (n_users, block_b)
    i_onehot = (jax.lax.broadcasted_iota(jnp.int32, (n_items, block_b), 0)
                == iid).astype(jnp.float32)              # (n_items, block_b)

    u_mlp = jnp.dot(ut_mlp_ref[...], u_onehot, preferred_element_type=jnp.float32)
    i_mlp = jnp.dot(it_mlp_ref[...], i_onehot, preferred_element_type=jnp.float32)
    u_mf = jnp.dot(ut_mf_ref[...], u_onehot, preferred_element_type=jnp.float32)
    i_mf = jnp.dot(it_mf_ref[...], i_onehot, preferred_element_type=jnp.float32)
    # each: (8, block_b)

    # MLP tower, feature-major.  concat([u_mlp, i_mlp]) @ W1 split into two dots.
    h = (jnp.dot(w1u_ref[...], u_mlp, preferred_element_type=jnp.float32)
         + jnp.dot(w1i_ref[...], i_mlp, preferred_element_type=jnp.float32)
         + b1_ref[...])                                  # (32, block_b)
    h = jnp.maximum(h, 0.0)
    h = jnp.dot(w2_ref[...], h, preferred_element_type=jnp.float32) + b2_ref[...]
    h = jnp.maximum(h, 0.0)                              # (8, block_b)

    # MF branch: elementwise product on dense vregs.
    mf = u_mf * i_mf                                     # (8, block_b)

    # Final affine (8+8 -> 1): concat eliminated by two weighted feature
    # reductions over the sublane axis; result is already the lane-dense
    # [1, block_b] output tile.
    logits = (jnp.sum(h * wa_mlp_ref[...] + mf * wa_mf_ref[...],
                      axis=0, keepdims=True)
              + ba_ref[...])                             # (1, block_b)
    out_ref[...] = jax.nn.sigmoid(logits)


def ncf_forward(params, user_input, item_input, *, block_b=2048):
    """user_input, item_input: int32 [B] index vectors -> [B, 1] ratings."""
    B = user_input.shape[0]
    n_blocks = pl.cdiv(B, block_b)
    Bp = n_blocks * block_b

    # Pad batch to a multiple of block_b (index 0 is a valid row; padded lanes
    # are computed but sliced away before returning).
    uid = jnp.pad(user_input.astype(jnp.int32), (0, Bp - B)).reshape(1, Bp)
    iid = jnp.pad(item_input.astype(jnp.int32), (0, Bp - B)).reshape(1, Bp)

    # One-time feature-major re-layout of tables / weights (wrapper-side plumbing).
    ut_mlp = params["emb_user_mlp"].T          # (8, num_users)
    it_mlp = params["emb_item_mlp"].T          # (8, num_items)
    ut_mf = params["emb_user_mf"].T            # (8, num_users)
    it_mf = params["emb_item_mf"].T            # (8, num_items)
    w1u = params["w1"][:8, :].T                # (32, 8)
    w1i = params["w1"][8:, :].T                # (32, 8)
    b1 = params["b1"].reshape(32, 1)
    w2 = params["w2"].T                        # (8, 32)
    b2 = params["b2"].reshape(8, 1)
    wa_mlp = params["wa"][:8, :]               # (8, 1)
    wa_mf = params["wa"][8:, :]                # (8, 1)
    ba = params["ba"].reshape(1, 1)

    weights = (ut_mlp, it_mlp, ut_mf, it_mf, w1u, w1i, b1, w2, b2,
               wa_mlp, wa_mf, ba)

    batch_spec = pl.BlockSpec((1, block_b), lambda i: (0, i))

    def const_spec(arr):
        # Full-array block, constant index_map -> stays VMEM-resident across steps.
        return pl.BlockSpec(arr.shape, lambda i: (0, 0))

    out = pl.pallas_call(
        ncf_kernel,
        out_shape=jax.ShapeDtypeStruct((1, Bp), jnp.float32),
        grid=(n_blocks,),
        in_specs=[batch_spec, batch_spec] + [const_spec(w) for w in weights],
        out_specs=batch_spec,
        compiler_params=pltpu.CompilerParams(
            dimension_semantics=("parallel",)),
    )(uid, iid, *weights)

    return out[0, :B].reshape(B, 1)


def init_params(key, num_users, num_items):
    ks = jax.random.split(key, 10)
    f32 = jnp.float32

    def linear_init(kw, kb, fan_in, fan_out):
        # PyTorch nn.Linear default: U(-1/sqrt(fan_in), 1/sqrt(fan_in))
        bound = 1.0 / jnp.sqrt(fan_in)
        w = jax.random.uniform(kw, (fan_in, fan_out), f32, -bound, bound)
        b = jax.random.uniform(kb, (1, fan_out), f32, -bound, bound)
        return w, b

    w1, b1 = linear_init(ks[4], ks[5], 16, 32)
    w2, b2 = linear_init(ks[6], ks[7], 32, 8)
    wa, ba = linear_init(ks[8], ks[9], 16, 1)

    return {
        # PyTorch nn.Embedding default: N(0, 1)
        "emb_user_mlp": jax.random.normal(ks[0], (num_users, 8), f32),
        "emb_item_mlp": jax.random.normal(ks[1], (num_items, 8), f32),
        "emb_user_mf": jax.random.normal(ks[2], (num_users, 8), f32),
        "emb_item_mf": jax.random.normal(ks[3], (num_items, 8), f32),
        "w1": w1, "b1": b1,
        "w2": w2, "b2": b2,
        "wa": wa, "ba": ba,
    }


def ncf_reference(params, user_input, item_input):
    """Pure-JAX reference matching the PyTorch forward."""
    u_mlp = params["emb_user_mlp"][user_input]
    i_mlp = params["emb_item_mlp"][item_input]
    u_mf = params["emb_user_mf"][user_input]
    i_mf = params["emb_item_mf"][item_input]
    mlp = jnp.concatenate([u_mlp, i_mlp], axis=-1)
    mf = u_mf * i_mf
    h = jnp.maximum(mlp @ params["w1"] + params["b1"], 0.0)
    h = jnp.maximum(h @ params["w2"] + params["b2"], 0.0)
    vec = jnp.concatenate([h, mf], axis=-1)
    return jax.nn.sigmoid(vec @ params["wa"] + params["ba"])


if __name__ == "__main__":
    key = jax.random.PRNGKey(0)
    num_users, num_items, batch = 16, 32, 8

    pkey, ukey, ikey = jax.random.split(key, 3)
    params = init_params(pkey, num_users, num_items)
    user_input = jax.random.randint(ukey, (batch,), 0, num_users, dtype=jnp.int32)
    item_input = jax.random.randint(ikey, (batch,), 0, num_items, dtype=jnp.int32)

    rating = ncf_forward(params, user_input, item_input, block_b=256)
    rating = jax.block_until_ready(rating)

    ref = ncf_reference(params, user_input, item_input)
    assert rating.shape == (batch, 1)
    assert jnp.allclose(rating, ref, atol=1e-5, rtol=1e-5)
    print("KERNEL_OK")
</pallas_src>

<mosaic_0001>
module attributes {stable_mosaic.version = 11 : i64} {
  func.func @ncf_kernel(%arg0: i32, %arg1: memref<1x256xi32, #tpu.memory_space<vmem>>, %arg2: memref<1x256xi32, #tpu.memory_space<vmem>>, %arg3: memref<8x16xf32, #tpu.memory_space<vmem>>, %arg4: memref<8x32xf32, #tpu.memory_space<vmem>>, %arg5: memref<8x16xf32, #tpu.memory_space<vmem>>, %arg6: memref<8x32xf32, #tpu.memory_space<vmem>>, %arg7: memref<32x8xf32, #tpu.memory_space<vmem>>, %arg8: memref<32x8xf32, #tpu.memory_space<vmem>>, %arg9: memref<32x1xf32, #tpu.memory_space<vmem>>, %arg10: memref<8x32xf32, #tpu.memory_space<vmem>>, %arg11: memref<8x1xf32, #tpu.memory_space<vmem>>, %arg12: memref<8x1xf32, #tpu.memory_space<vmem>>, %arg13: memref<8x1xf32, #tpu.memory_space<vmem>>, %arg14: memref<1x1xf32, #tpu.memory_space<vmem>>, %arg15: memref<1x256xf32, #tpu.memory_space<vmem>>) attributes {dimension_semantics = [#tpu.dimension_semantics<parallel>], iteration_bounds = array<i64: 1>, scalar_prefetch = 0 : i64, scratch_operands = 0 : i64, tpu.core_type = #tpu.core_type<tc>, window_params = [{transform_indices = @transform_0, window_bounds = array<i64: 1, 256>}, {transform_indices = @transform_1, window_bounds = array<i64: 1, 256>}, {pipeline_mode = #tpu.pipeline_mode<synchronous>, transform_indices = @transform_2, window_bounds = array<i64: 8, 16>}, {pipeline_mode = #tpu.pipeline_mode<synchronous>, transform_indices = @transform_3, window_bounds = array<i64: 8, 32>}, {pipeline_mode = #tpu.pipeline_mode<synchronous>, transform_indices = @transform_4, window_bounds = array<i64: 8, 16>}, {pipeline_mode = #tpu.pipeline_mode<synchronous>, transform_indices = @transform_5, window_bounds = array<i64: 8, 32>}, {pipeline_mode = #tpu.pipeline_mode<synchronous>, transform_indices = @transform_6, window_bounds = array<i64: 32, 8>}, {pipeline_mode = #tpu.pipeline_mode<synchronous>, transform_indices = @transform_7, window_bounds = array<i64: 32, 8>}, {pipeline_mode = #tpu.pipeline_mode<synchronous>, transform_indices = @transform_8, window_bounds = array<i64: 32, 1>}, {pipeline_mode = #tpu.pipeline_mode<synchronous>, transform_indices = @transform_9, window_bounds = array<i64: 8, 32>}, {pipeline_mode = #tpu.pipeline_mode<synchronous>, transform_indices = @transform_10, window_bounds = array<i64: 8, 1>}, {pipeline_mode = #tpu.pipeline_mode<synchronous>, transform_indices = @transform_11, window_bounds = array<i64: 8, 1>}, {pipeline_mode = #tpu.pipeline_mode<synchronous>, transform_indices = @transform_12, window_bounds = array<i64: 8, 1>}, {pipeline_mode = #tpu.pipeline_mode<synchronous>, transform_indices = @transform_13, window_bounds = array<i64: 1, 1>}, {transform_indices = @transform_14, window_bounds = array<i64: 1, 256>}]} {
    %c0 = arith.constant 0 : index
    %c0_0 = arith.constant 0 : index
    %0 = vector.load %arg1[%c0, %c0_0] : memref<1x256xi32, #tpu.memory_space<vmem>>, vector<1x256xi32>
    %c0_1 = arith.constant 0 : index
    %c0_2 = arith.constant 0 : index
    %1 = vector.load %arg2[%c0_1, %c0_2] : memref<1x256xi32, #tpu.memory_space<vmem>>, vector<1x256xi32>
    %2 = tpu.iota {dimensions = array<i32: 0>} : vector<16x256xi32>
    %3 = vector.broadcast %0 : vector<1x256xi32> to vector<16x256xi32>
    %4 = arith.cmpi eq, %2, %3 : vector<16x256xi32>
    %5 = arith.extui %4 : vector<16x256xi1> to vector<16x256xi32>
    %6 = arith.sitofp %5 : vector<16x256xi32> to vector<16x256xf32>
    %7 = tpu.iota {dimensions = array<i32: 0>} : vector<32x256xi32>
    %8 = vector.broadcast %1 : vector<1x256xi32> to vector<32x256xi32>
    %9 = arith.cmpi eq, %7, %8 : vector<32x256xi32>
    %10 = arith.extui %9 : vector<32x256xi1> to vector<32x256xi32>
    %11 = arith.sitofp %10 : vector<32x256xi32> to vector<32x256xf32>
    %c0_3 = arith.constant 0 : index
    %c0_4 = arith.constant 0 : index
    %12 = vector.load %arg3[%c0_3, %c0_4] : memref<8x16xf32, #tpu.memory_space<vmem>>, vector<8x16xf32>
    %cst = arith.constant dense<0.000000e+00> : vector<8x256xf32>
    %13 = tpu.matmul %12, %6, %cst {dimension_numbers = #tpu.dot_dimension_numbers<[1], [0], [0], [1], [0, 0, 1, 1], [], []>} : vector<8x16xf32>, vector<16x256xf32>, vector<8x256xf32> -> vector<8x256xf32>
    %c0_5 = arith.constant 0 : index
    %c0_6 = arith.constant 0 : index
    %14 = vector.load %arg4[%c0_5, %c0_6] : memref<8x32xf32, #tpu.memory_space<vmem>>, vector<8x32xf32>
    %cst_7 = arith.constant dense<0.000000e+00> : vector<8x256xf32>
    %15 = tpu.matmul %14, %11, %cst_7 {dimension_numbers = #tpu.dot_dimension_numbers<[1], [0], [0], [1], [0, 0, 1, 1], [], []>} : vector<8x32xf32>, vector<32x256xf32>, vector<8x256xf32> -> vector<8x256xf32>
    %c0_8 = arith.constant 0 : index
    %c0_9 = arith.constant 0 : index
    %16 = vector.load %arg5[%c0_8, %c0_9] : memref<8x16xf32, #tpu.memory_space<vmem>>, vector<8x16xf32>
    %cst_10 = arith.constant dense<0.000000e+00> : vector<8x256xf32>
    %17 = tpu.matmul %16, %6, %cst_10 {dimension_numbers = #tpu.dot_dimension_numbers<[1], [0], [0], [1], [0, 0, 1, 1], [], []>} : vector<8x16xf32>, vector<16x256xf32>, vector<8x256xf32> -> vector<8x256xf32>
    %c0_11 = arith.constant 0 : index
    %c0_12 = arith.constant 0 : index
    %18 = vector.load %arg6[%c0_11, %c0_12] : memref<8x32xf32, #tpu.memory_space<vmem>>, vector<8x32xf32>
    %cst_13 = arith.constant dense<0.000000e+00> : vector<8x256xf32>
    %19 = tpu.matmul %18, %11, %cst_13 {dimension_numbers = #tpu.dot_dimension_numbers<[1], [0], [0], [1], [0, 0, 1, 1], [], []>} : vector<8x32xf32>, vector<32x256xf32>, vector<8x256xf32> -> vector<8x256xf32>
    %c0_14 = arith.constant 0 : index
    %c0_15 = arith.constant 0 : index
    %20 = vector.load %arg7[%c0_14, %c0_15] : memref<32x8xf32, #tpu.memory_space<vmem>>, vector<32x8xf32>
    %cst_16 = arith.constant dense<0.000000e+00> : vector<32x256xf32>
    %21 = tpu.matmul %20, %13, %cst_16 {dimension_numbers = #tpu.dot_dimension_numbers<[1], [0], [0], [1], [0, 0, 1, 1], [], []>} : vector<32x8xf32>, vector<8x256xf32>, vector<32x256xf32> -> vector<32x256xf32>
    %c0_17 = arith.constant 0 : index
    %c0_18 = arith.constant 0 : index
    %22 = vector.load %arg8[%c0_17, %c0_18] : memref<32x8xf32, #tpu.memory_space<vmem>>, vector<32x8xf32>
    %cst_19 = arith.constant dense<0.000000e+00> : vector<32x256xf32>
    %23 = tpu.matmul %22, %15, %cst_19 {dimension_numbers = #tpu.dot_dimension_numbers<[1], [0], [0], [1], [0, 0, 1, 1], [], []>} : vector<32x8xf32>, vector<8x256xf32>, vector<32x256xf32> -> vector<32x256xf32>
    %24 = arith.addf %21, %23 : vector<32x256xf32>
    %c0_20 = arith.constant 0 : index
    %c0_21 = arith.constant 0 : index
    %25 = vector.load %arg9[%c0_20, %c0_21] : memref<32x1xf32, #tpu.memory_space<vmem>>, vector<32x1xf32>
    %26 = vector.broadcast %25 : vector<32x1xf32> to vector<32x256xf32>
    %27 = arith.addf %24, %26 : vector<32x256xf32>
    %cst_22 = arith.constant 0.000000e+00 : f32
    %28 = vector.broadcast %cst_22 : f32 to vector<32x256xf32>
    %29 = arith.maximumf %27, %28 : vector<32x256xf32>
    %c0_23 = arith.constant 0 : index
    %c0_24 = arith.constant 0 : index
    %30 = vector.load %arg10[%c0_23, %c0_24] : memref<8x32xf32, #tpu.memory_space<vmem>>, vector<8x32xf32>
    %cst_25 = arith.constant dense<0.000000e+00> : vector<8x256xf32>
    %31 = tpu.matmul %30, %29, %cst_25 {dimension_numbers = #tpu.dot_dimension_numbers<[1], [0], [0], [1], [0, 0, 1, 1], [], []>} : vector<8x32xf32>, vector<32x256xf32>, vector<8x256xf32> -> vector<8x256xf32>
    %c0_26 = arith.constant 0 : index
    %c0_27 = arith.constant 0 : index
    %32 = vector.load %arg11[%c0_26, %c0_27] : memref<8x1xf32, #tpu.memory_space<vmem>>, vector<8x1xf32>
    %33 = vector.broadcast %32 : vector<8x1xf32> to vector<8x256xf32>
    %34 = arith.addf %31, %33 : vector<8x256xf32>
    %cst_28 = arith.constant 0.000000e+00 : f32
    %35 = vector.broadcast %cst_28 : f32 to vector<8x256xf32>
    %36 = arith.maximumf %34, %35 : vector<8x256xf32>
    %37 = arith.mulf %17, %19 : vector<8x256xf32>
    %c0_29 = arith.constant 0 : index
    %c0_30 = arith.constant 0 : index
    %38 = vector.load %arg12[%c0_29, %c0_30] : memref<8x1xf32, #tpu.memory_space<vmem>>, vector<8x1xf32>
    %39 = vector.broadcast %38 : vector<8x1xf32> to vector<8x256xf32>
    %40 = arith.mulf %36, %39 : vector<8x256xf32>
    %c0_31 = arith.constant 0 : index
    %c0_32 = arith.constant 0 : index
    %41 = vector.load %arg13[%c0_31, %c0_32] : memref<8x1xf32, #tpu.memory_space<vmem>>, vector<8x1xf32>
    %42 = vector.broadcast %41 : vector<8x1xf32> to vector<8x256xf32>
    %43 = arith.mulf %37, %42 : vector<8x256xf32>
    %44 = arith.addf %40, %43 : vector<8x256xf32>
    %cst_33 = arith.constant dense<0.000000e+00> : vector<256xf32>
    %45 = vector.multi_reduction <add>, %44, %cst_33 [0] : vector<8x256xf32> to vector<256xf32>
    %46 = vector.shape_cast %45 : vector<256xf32> to vector<1x256xf32>
    %c0_34 = arith.constant 0 : index
    %c0_35 = arith.constant 0 : index
    %47 = vector.load %arg14[%c0_34, %c0_35] : memref<1x1xf32, #tpu.memory_space<vmem>>, vector<1x1xf32>
    %48 = vector.broadcast %47 : vector<1x1xf32> to vector<1x256xf32>
    %49 = arith.addf %46, %48 : vector<1x256xf32>
    %50 = arith.negf %49 : vector<1x256xf32>
    %51 = math.exp %50 : vector<1x256xf32>
    %cst_36 = arith.constant 1.000000e+00 : f32
    %52 = vector.broadcast %cst_36 : f32 to vector<1x256xf32>
    %53 = arith.addf %52, %51 : vector<1x256xf32>
    %54 = arith.divf %52, %53 : vector<1x256xf32>
    %c0_37 = arith.constant 0 : index
    %c0_38 = arith.constant 0 : index
    %55 = vector.load %arg15[%c0_37, %c0_38] : memref<1x256xf32, #tpu.memory_space<vmem>>, vector<1x256xf32>
    tpu.vector_store %arg15[%c0_37, %c0_38], %54 {strides = array<i32>} : memref<1x256xf32, #tpu.memory_space<vmem>>, vector<1x256xf32>,
    return
  }
  func.func @transform_0(%arg0: i32) -> (i32, i32) {
    %c0_i32 = arith.constant 0 : i32
    %c0_i32_0 = arith.constant 0 : i32
    return %c0_i32, %arg0 : i32, i32
  }
  func.func @transform_1(%arg0: i32) -> (i32, i32) {
    %c0_i32 = arith.constant 0 : i32
    %c0_i32_0 = arith.constant 0 : i32
    return %c0_i32, %arg0 : i32, i32
  }
  func.func @transform_2(%arg0: i32) -> (i32, i32) {
    %c0_i32 = arith.constant 0 : i32
    %c0_i32_0 = arith.constant 0 : i32
    %c0_i32_1 = arith.constant 0 : i32
    return %c0_i32, %c0_i32_0 : i32, i32
  }
  func.func @transform_3(%arg0: i32) -> (i32, i32) {
    %c0_i32 = arith.constant 0 : i32
    %c0_i32_0 = arith.constant 0 : i32
    %c0_i32_1 = arith.constant 0 : i32
    return %c0_i32, %c0_i32_0 : i32, i32
  }
  func.func @transform_4(%arg0: i32) -> (i32, i32) {
    %c0_i32 = arith.constant 0 : i32
    %c0_i32_0 = arith.constant 0 : i32
    %c0_i32_1 = arith.constant 0 : i32
    return %c0_i32, %c0_i32_0 : i32, i32
  }
  func.func @transform_5(%arg0: i32) -> (i32, i32) {
    %c0_i32 = arith.constant 0 : i32
    %c0_i32_0 = arith.constant 0 : i32
    %c0_i32_1 = arith.constant 0 : i32
    return %c0_i32, %c0_i32_0 : i32, i32
  }
  func.func @transform_6(%arg0: i32) -> (i32, i32) {
    %c0_i32 = arith.constant 0 : i32
    %c0_i32_0 = arith.constant 0 : i32
    %c0_i32_1 = arith.constant 0 : i32
    return %c0_i32, %c0_i32_0 : i32, i32
  }
  func.func @transform_7(%arg0: i32) -> (i32, i32) {
    %c0_i32 = arith.constant 0 : i32
    %c0_i32_0 = arith.constant 0 : i32
    %c0_i32_1 = arith.constant 0 : i32
    return %c0_i32, %c0_i32_0 : i32, i32
  }
  func.func @transform_8(%arg0: i32) -> (i32, i32) {
    %c0_i32 = arith.constant 0 : i32
    %c0_i32_0 = arith.constant 0 : i32
    %c0_i32_1 = arith.constant 0 : i32
    return %c0_i32, %c0_i32_0 : i32, i32
  }
  func.func @transform_9(%arg0: i32) -> (i32, i32) {
    %c0_i32 = arith.constant 0 : i32
    %c0_i32_0 = arith.constant 0 : i32
    %c0_i32_1 = arith.constant 0 : i32
    return %c0_i32, %c0_i32_0 : i32, i32
  }
  func.func @transform_10(%arg0: i32) -> (i32, i32) {
    %c0_i32 = arith.constant 0 : i32
    %c0_i32_0 = arith.constant 0 : i32
    %c0_i32_1 = arith.constant 0 : i32
    return %c0_i32, %c0_i32_0 : i32, i32
  }
  func.func @transform_11(%arg0: i32) -> (i32, i32) {
    %c0_i32 = arith.constant 0 : i32
    %c0_i32_0 = arith.constant 0 : i32
    %c0_i32_1 = arith.constant 0 : i32
    return %c0_i32, %c0_i32_0 : i32, i32
  }
  func.func @transform_12(%arg0: i32) -> (i32, i32) {
    %c0_i32 = arith.constant 0 : i32
    %c0_i32_0 = arith.constant 0 : i32
    %c0_i32_1 = arith.constant 0 : i32
    return %c0_i32, %c0_i32_0 : i32, i32
  }
  func.func @transform_13(%arg0: i32) -> (i32, i32) {
    %c0_i32 = arith.constant 0 : i32
    %c0_i32_0 = arith.constant 0 : i32
    %c0_i32_1 = arith.constant 0 : i32
    return %c0_i32, %c0_i32_0 : i32, i32
  }
  func.func @transform_14(%arg0: i32) -> (i32, i32) {
    %c0_i32 = arith.constant 0 : i32
    %c0_i32_0 = arith.constant 0 : i32
    return %c0_i32, %arg0 : i32, i32
  }
}

</mosaic_0001>

<bundles_post_ra>
// kernel: tpu_custom_call.1
= control target key start
LH: loop header
LB: loop body
LE: loop exit
PB: predicated region body
PF: predicated region fallthrough
CT: control target
= control target key end

     0   :  { %s964_s0 = inlined_call_operand.vmem [shape: s32[1,256], index: 0, kind: input, shape index: {}]   ;;  %s965_s1 = inlined_call_operand.vmem [shape: s32[1,256], index: 1, kind: input, shape index: {}]   ;;  %s966_s2 = inlined_call_operand.vmem [shape: f32[8,16], index: 2, kind: input, shape index: {}]   ;;  %s967_s3 = inlined_call_operand.vmem [shape: f32[8,32], index: 3, kind: input, shape index: {}]   ;;  %s968_s4 = inlined_call_operand.vmem [shape: f32[8,16], index: 4, kind: input, shape index: {}]   ;;  %s969_s5 = inlined_call_operand.vmem [shape: f32[8,32], index: 5, kind: input, shape index: {}]   ;;  %s970_s6 = inlined_call_operand.vmem [shape: f32[32,8], index: 6, kind: input, shape index: {}]   ;;  %s971_s7 = inlined_call_operand.vmem [shape: f32[32,8], index: 7, kind: input, shape index: {}]   ;;  %s972_s8 = inlined_call_operand.vmem [shape: f32[32,1], index: 8, kind: input, shape index: {}]   ;;  %s973_s9 = inlined_call_operand.vmem [shape: f32[8,32], index: 9, kind: input, shape index: {}]   ;;  %s974_s10 = inlined_call_operand.vmem [shape: f32[8,1], index: 10, kind: input, shape index: {}]   ;;  %s975_s11 = inlined_call_operand.vmem [shape: f32[8,1], index: 11, kind: input, shape index: {}]   ;;  %s976_s12 = inlined_call_operand.vmem [shape: f32[8,1], index: 12, kind: input, shape index: {}]   ;;  %s977_s13 = inlined_call_operand.<no memory space> [shape: f32[1,1], index: 13, kind: input, shape index: {}]   ;;  %s978_s14 = inlined_call_operand.hbm [shape: f32[1,256], index: 14, kind: output, shape index: {}]  }
   0x1   :  { %v19_v0 = vstv %s977_s13 }
   0x2   :  { %20 = vst [vmem:[#allocation2] sm:$0x1] %v19_v0 }
   0x3   :  { %v51_v1 = vld [vmem:[%s965_s1] sm:$0x3]  ;;  %v52_v2 = vlaneseq  ;;  %v427_v7 = vld [vmem:[%s972_s8 + $0x18] sm:$0xff]  ;;  %v726_v10 = vmov 0  }
   0x4   :  { %v50_v3 = vld [vmem:[%s964_s0] sm:$0x3]  ;;  %v71_v5 = vperm.slane %v51_v1, 0  ;;  %v72_v6 = vperm.slane %v51_v1, 1  ;;  %689 = vset.pattern.permute.xlu0 %v726_v10  ;;  %690 = vset.pattern.permute.xlu1 %v726_v10 }
   0x5   :  { %v53_v4 = vshrl.u32 %v52_v2, 7  ;;  %v55_v8 = vperm.slane %v50_v3, 0  ;;  %v56_v9 = vperm.slane %v50_v3, 1 }
   0x6   :  { %21 = vsyncpa [#allocation4], 0  ;;  %445 = vperm.xlu0 %689, %v427_v7   ;;  %691 = vset.pattern.permute.xlu2 %v726_v10  ;;  %v727_v15 = vmov 1.0   ;;  %v97_v19 = vld [vmem:[%s966_s2] sm:$0xff]  ;;  %vm98_vm10 = vcmask 130048   ;;  %vm143_vm13 = vcmask 261120  }
   0x7   :  { %v70_v11 = vadd.s32 24, %v53_v4  ;;  %v69_v12 = vadd.s32 16, %v53_v4  ;;  %v54_v13 = vadd.s32 8, %v53_v4  ;;  %vm817_vm0 = vcmp.eq.s32.totalorder %v53_v4, %v55_v8  ;;  %v142_v20 = vld [vmem:[%s967_s3] sm:$0xff]  ;;  %v426_v23 = vld [vmem:[%s972_s8 + $0x10] sm:$0xff]  ;;  %v425_v25 = vld [vmem:[%s972_s8 + $0x8] sm:$0xff] }
   0x8   :  { %vm831_vm7 = vcmp.eq.s32.totalorder %v53_v4, %v56_v9  ;;  %vm73_vm11 = vcmp.eq.s32.totalorder %v53_v4, %v71_v5  ;;  %vm74_vm12 = vcmp.eq.s32.totalorder %v53_v4, %v72_v6  ;;  %v231_v21 = vld [vmem:[%s969_s5] sm:$0xff]  ;;  %435 = vperm.xlu1 %690, %v425_v25   ;;  %vm283_vm14 = vcmask 64512   ;;  %v276_v34 = vld [vmem:[%s970_s6 + $0x8] sm:$0xff]  ;;  %v277_v36 = vld [vmem:[%s970_s6 + $0x10] sm:$0xff]  ;;  %s613_s27 = sshll.u32 %s978_s14, 4  ;;  %s614_s27 = int_to_ptr.hbm [resolvable:$true] %s613_s27 }
   0x9   :  { %vm79_vm1 = vcmp.eq.s32.totalorder %v70_v11, %v71_v5  ;;  %vm80_vm2 = vcmp.eq.s32.totalorder %v70_v11, %v72_v6  ;;  %vm77_vm3 = vcmp.eq.s32.totalorder %v69_v12, %v71_v5  ;;  %vm78_vm4 = vcmp.eq.s32.totalorder %v69_v12, %v72_v6  ;;  %v187_v22 = vld [vmem:[%s968_s4] sm:$0xff]  ;;  %v280_v35 = vld [vmem:[%s971_s7 + $0x8] sm:$0xff]  ;;  %v281_v37 = vld [vmem:[%s971_s7 + $0x10] sm:$0xff] }
   0xa   :  { %640 = vmatpush.msk.msra.mxu2 %vm79_vm1, %v727_v15  ;;  %645 = vmatpush.msk.msra.mxu3 %vm80_vm2, %v727_v15  ;;  %vm823_vm5 = vcmp.eq.s32.totalorder %v54_v13, %v55_v8  ;;  %vm827_vm6 = vcmp.eq.s32.totalorder %v54_v13, %v56_v9  ;;  %vm75_vm8 = vcmp.eq.s32.totalorder %v54_v13, %v71_v5  ;;  %v526_v24 = vld [vmem:[%s976_s12] sm:$0xff]  ;;  %v278_v38 = vld [vmem:[%s970_s6 + $0x18] sm:$0xff] }
   0xb   :  { %634 = vmatpush.msk.msra.mxu0 %vm823_vm5, %v727_v15  ;;  %637 = vmatpush.msk.msra.mxu1 %vm827_vm6, %v727_v15  ;;  %vm76_vm9 = vcmp.eq.s32.totalorder %v54_v13, %v72_v6  ;;  %v424_v26 = vld [vmem:[%s972_s8] sm:$0xff]  ;;  %v282_v39 = vld [vmem:[%s971_s7 + $0x18] sm:$0xff] }
   0xc   :  { %641 = vmatpush.msk.msra.mxu2 %vm77_vm3, %v727_v15  ;;  %646 = vmatpush.msk.msra.mxu3 %vm78_vm4, %v727_v15  ;;  %v275_v27 = vld [vmem:[%s970_s6] sm:$0xff] }
   0xd   :  { %635 = vmatpush.msk.msra.mxu0 %vm817_vm0, %v727_v15  ;;  %638 = vmatpush.msk.msra.mxu1 %vm831_vm7, %v727_v15  ;;  %v548_v30 = vld [vmem:[#allocation2] sm:$0x1] }
   0xe   :  { %642 = vmatpush.msk.msra.mxu2 %vm75_vm8, %v727_v15  ;;  %647 = vmatpush.msk.msra.mxu3 %vm76_vm9, %v727_v15  ;;  %v279_v31 = vld [vmem:[%s971_s7] sm:$0xff] }
   0xf   :  { %636 = vmatmul.msk.f32.vlgmr.msra.gmra.mxu0 %vm98_vm10, %v97_v19  ;;  %639 = vmatmul.msk.f32.vlgmr.msra.gmra.mxu1 %vm98_vm10, %v97_v19  ;;  %v465_v50 = vld [vmem:[%s974_s10] sm:$0xff] }
  0x10   :  { %643 = vmatpush.msk.msra.mxu2 %vm73_vm11, %v727_v15  ;;  %648 = vmatpush.msk.msra.mxu3 %vm74_vm12, %v727_v15  ;;  %v518_v55 = vld [vmem:[%s975_s11] sm:$0xff] }
  0x11   :  { %644 = vmatmul.msk.f32.vlgmr.msra.gmra.mxu2 %vm143_vm13, %v142_v20  ;;  %649 = vmatmul.msk.f32.vlgmr.msra.gmra.mxu3 %vm143_vm13, %v142_v20 }
  0x12   :  { %656 = vmatpush.msk.msrb.mxu2 %vm79_vm1, %v727_v15  ;;  %661 = vmatpush.msk.msrb.mxu3 %vm80_vm2, %v727_v15 }
  0x13   :  { %650 = vmatpush.msk.msrb.mxu0 %vm823_vm5, %v727_v15  ;;  %653 = vmatpush.msk.msrb.mxu1 %vm827_vm6, %v727_v15  ;;  %vm598_vm6 = vcmask 1040384  }
  0x14   :  { %657 = vmatpush.msk.msrb.mxu2 %vm77_vm3, %v727_v15  ;;  %662 = vmatpush.msk.msrb.mxu3 %vm78_vm4, %v727_v15 }
  0x15   :  { %651 = vmatpush.msk.msrb.mxu0 %vm817_vm0, %v727_v15  ;;  %654 = vmatpush.msk.msrb.mxu1 %vm831_vm7, %v727_v15 }
  0x16   :  { %658 = vmatpush.msk.msrb.mxu2 %vm75_vm8, %v727_v15  ;;  %663 = vmatpush.msk.msrb.mxu3 %vm76_vm9, %v727_v15  ;;  %vm603_vm8 = vcmp.lt.s32.totalorder %v52_v2, 256 }
  0x17   :  { %652 = vmatmul.msk.f32.vlgmr.msrb.gmra.mxu0 %vm98_vm10, %v187_v22  ;;  %655 = vmatmul.msk.f32.vlgmr.msrb.gmra.mxu1 %vm98_vm10, %v187_v22 }
  0x18   :  { %659 = vmatpush.msk.msrb.mxu2 %vm73_vm11, %v727_v15  ;;  %664 = vmatpush.msk.msrb.mxu3 %vm74_vm12, %v727_v15 }
  0x19   :  { %660 = vmatmul.msk.f32.vlgmr.msrb.gmra.mxu2 %vm143_vm13, %v231_v21  ;;  %665 = vmatmul.msk.f32.vlgmr.msrb.gmra.mxu3 %vm143_vm13, %v231_v21 }
  0x1a   :  { %440 = vperm.xlu0 %689, %v426_v23   ;;  %430 = vperm.xlu1 %690, %v424_v26  }
  0x1b   :  { %468 = vperm.xlu2 %691, %v465_v50  }
  0x22   :  { %529 = vperm.xlu0 %689, %v526_v24   ;;  %551 = vperm.xlu1 %690, %v548_v30  }
  0x23   :  { %521 = vperm.xlu2 %691, %v518_v55  }
  0x75   :  { %v469_v30 = vpop.permute.xlu2 %468 }
  0x78   :  { %v446_v56 = vpop.permute.xlu0 %445 }
  0x7a   :  { %v436_v61 = vpop.permute.xlu1 %435 }
  0x8c   :  { %v119_v28 = vpop.f32.mrf.mxu0  ;;  %v139_v29 = vpop.f32.mrf.mxu1 }
  0x8d   :  { %381 = vmatpush.msra.mxu2 %v119_v28  ;;  %410 = vmatpush.msra.mxu3 %v139_v29  ;;  %v441_v9 = vpop.permute.xlu0 %440  ;;  %v431_v16 = vpop.permute.xlu1 %430  ;;  %v464_v29 = vld [vmem:[%s973_s9] sm:$0xff]  ;;  %s728_s9 = smov [#allocation3]  }
  0x8e   :  { %674 = vmatmul.msk.f32.vlgmr.msra.gmra.mxu2 %vm283_vm14, %v275_v27  ;;  %678 = vmatmul.msk.f32.vlgmr.msra.gmra.mxu3 %vm283_vm14, %v275_v27  ;;  %s611_s25 = sshll.u32 %s728_s9, 4  ;;  %s612_s25 = int_to_ptr.vmem [resolvable:$true] %s611_s25 }
  0x94   :  { %v164_v32 = vpop.f32.mrf.mxu2  ;;  %v184_v33 = vpop.f32.mrf.mxu3 }
  0x95   :  { %311 = vmatpush.msra.mxu0 %v164_v32  ;;  %340 = vmatpush.msra.mxu1 %v184_v33  ;;  %v208_v42 = vpop.f32.mrf.mxu0  ;;  %v228_v43 = vpop.f32.mrf.mxu1 }
  0x96   :  { %666 = vmatmul.msk.f32.vlgmr.msra.gmra.mxu0 %vm283_vm14, %v279_v31  ;;  %670 = vmatmul.msk.f32.vlgmr.msra.gmra.mxu1 %vm283_vm14, %v279_v31  ;;  %v552_v55 = vpop.permute.xlu1 %551 }
  0x97   :  { %675 = vmatmul.msk.f32.gmra.mxu2 %vm283_vm14, %v276_v34  ;;  %679 = vmatmul.msk.f32.gmra.mxu3 %vm283_vm14, %v276_v34 }
  0x9c   :  { %v272_v40 = vpop.f32.mrf.mxu3  ;;  %v252_v41 = vpop.f32.mrf.mxu2 }
  0x9d   :  { %v937_v44 = vmul.f32 %v252_v41, %v208_v42  ;;  %v939_v45 = vmul.f32 %v272_v40, %v228_v43 }
  0x9e   :  { %667 = vmatmul.msk.f32.gmra.mxu0 %vm283_vm14, %v280_v35  ;;  %671 = vmatmul.msk.f32.gmra.mxu1 %vm283_vm14, %v280_v35  ;;  %v530_v35 = vpop.permute.xlu0 %529 }
  0x9f   :  { %676 = vmatmul.msk.f32.gmra.mxu2 %vm283_vm14, %v277_v36  ;;  %680 = vmatmul.msk.f32.gmra.mxu3 %vm283_vm14, %v277_v36  ;;  %v533_v40 = vmul.f32 %v530_v35, %v939_v45 }
  0xa6   :  { %668 = vmatmul.msk.f32.gmra.mxu0 %vm283_vm14, %v281_v37  ;;  %672 = vmatmul.msk.f32.gmra.mxu1 %vm283_vm14, %v281_v37 }
  0xa7   :  { %677 = vmatmul.msk.f32.gmra.mxu2 %vm283_vm14, %v278_v38  ;;  %681 = vmatmul.msk.f32.gmra.mxu3 %vm283_vm14, %v278_v38  ;;  %v522_v38 = vpop.permute.xlu2 %521 }
  0xae   :  { %669 = vmatmul.msk.f32.gmra.mxu0 %vm283_vm14, %v282_v39  ;;  %673 = vmatmul.msk.f32.gmra.mxu1 %vm283_vm14, %v282_v39  ;;  %v532_v39 = vmul.f32 %v530_v35, %v937_v44 }
 0x111   :  { %v383_v46 = vpop.f32.mrf.mxu2  ;;  %v412_v47 = vpop.f32.mrf.mxu3 }
 0x113   :  { %v313_v48 = vpop.f32.mrf.mxu0  ;;  %v342_v49 = vpop.f32.mrf.mxu1 }
 0x114   :  { %v384_v10 = vadd.f32 %v383_v46, %v313_v48  ;;  %v413_v11 = vadd.f32 %v412_v47, %v342_v49 }
 0x116   :  { %v448_v21 = vadd.f32 %v431_v16, %v384_v10  ;;  %v449_v22 = vadd.f32 %v431_v16, %v413_v11 }
 0x118   :  { %v456_v27 = vmax.f32 %v448_v21, 0.0  ;;  %v457_v28 = vmax.f32 %v449_v22, 0.0 }
 0x11a   :  { %v386_v51 = vpop.f32.mrf.mxu2  ;;  %v415_v52 = vpop.f32.mrf.mxu3 }
 0x11b   :  { %v316_v53 = vpop.f32.mrf.mxu0  ;;  %v345_v54 = vpop.f32.mrf.mxu1 }
 0x11c   :  { %v387_v5 = vadd.f32 %v386_v51, %v316_v53  ;;  %v416_v6 = vadd.f32 %v415_v52, %v345_v54 }
 0x11e   :  { %v450_v17 = vadd.f32 %v436_v61, %v387_v5  ;;  %v451_v18 = vadd.f32 %v436_v61, %v416_v6 }
 0x120   :  { %v458_v25 = vmax.f32 %v450_v17, 0.0  ;;  %v459_v26 = vmax.f32 %v451_v18, 0.0 }
 0x122   :  { %v389_v57 = vpop.f32.mrf.mxu2  ;;  %v418_v58 = vpop.f32.mrf.mxu3 }
 0x123   :  { %v319_v59 = vpop.f32.mrf.mxu0  ;;  %v348_v60 = vpop.f32.mrf.mxu1 }
 0x124   :  { %v390_v62 = vadd.f32 %v389_v57, %v319_v59  ;;  %v419_v63 = vadd.f32 %v418_v58, %v348_v60  ;;  %v554_v58 = vperm.slane %v552_v55, 0 }
 0x126   :  { %v452_v12 = vadd.f32 %v441_v9, %v390_v62  ;;  %v453_v13 = vadd.f32 %v441_v9, %v419_v63 }
 0x128   :  { %v460_v23 = vmax.f32 %v452_v12, 0.0  ;;  %v461_v24 = vmax.f32 %v453_v13, 0.0 }
 0x12a   :  { %v392_v0 = vpop.f32.mrf.mxu2  ;;  %v421_v1 = vpop.f32.mrf.mxu3 }
 0x12b   :  { %v322_v3 = vpop.f32.mrf.mxu0  ;;  %v351_v4 = vpop.f32.mrf.mxu1 }
 0x12c   :  { %v393_v7 = vadd.f32 %v392_v0, %v322_v3  ;;  %v422_v8 = vadd.f32 %v421_v1, %v351_v4 }
 0x12e   :  { %v454_v14 = vadd.f32 %v446_v56, %v393_v7  ;;  %v455_v15 = vadd.f32 %v446_v56, %v422_v8 }
 0x130   :  { %v462_v19 = vmax.f32 %v454_v14, 0.0  ;;  %v463_v20 = vmax.f32 %v455_v15, 0.0 }
 0x132   :  { %486 = vmatpush.msrb.mxu0 %v462_v19  ;;  %506 = vmatpush.msrb.mxu1 %v463_v20 }
 0x134   :  { %487 = vmatpush.msrb.mxu0 %v460_v23  ;;  %507 = vmatpush.msrb.mxu1 %v461_v24 }
 0x136   :  { %488 = vmatpush.msrb.mxu0 %v458_v25  ;;  %508 = vmatpush.msrb.mxu1 %v459_v26 }
 0x138   :  { %489 = vmatpush.msrb.mxu0 %v456_v27  ;;  %509 = vmatpush.msrb.mxu1 %v457_v28 }
 0x139   :  { %682 = vmatmul.msk.f32.vlgmr.msrb.gmra.mxu0 %vm143_vm13, %v464_v29  ;;  %683 = vmatmul.msk.f32.vlgmr.msrb.gmra.mxu1 %vm143_vm13, %v464_v29 }
 0x1b6   :  { %v491_v31 = vpop.f32.mrf.mxu0  ;;  %v511_v32 = vpop.f32.mrf.mxu1 }
 0x1b7   :  { %v492_v33 = vadd.f32 %v491_v31, %v469_v30  ;;  %v512_v34 = vadd.f32 %v511_v32, %v469_v30 }
 0x1b9   :  { %v514_v36 = vmax.f32 %v492_v33, 0.0  ;;  %v515_v37 = vmax.f32 %v512_v34, 0.0 }
 0x1bb   :  { %v524_v41 = vmul.f32 %v522_v38, %v514_v36  ;;  %v525_v42 = vmul.f32 %v522_v38, %v515_v37 }
 0x1bd   :  { %v534_v43 = vadd.f32 %v532_v39, %v524_v41  ;;  %v535_v46 = vadd.f32 %v533_v40, %v525_v42 }
 0x1bf   :  { %v536_v47 = vrot.slane %v534_v43, 4  ;;  %v542_v48 = vrot.slane %v535_v46, 4 }
 0x1c1   :  { %v537_v49 = vadd.f32 %v536_v47, %v534_v43  ;;  %v543_v50 = vadd.f32 %v542_v48, %v535_v46 }
 0x1c3   :  { %v538_v51 = vrot.slane %v537_v49, 2  ;;  %v544_v52 = vrot.slane %v543_v50, 2 }
 0x1c5   :  { %v539_v53 = vadd.f32 %v538_v51, %v537_v49  ;;  %v545_v54 = vadd.f32 %v544_v52, %v543_v50 }
 0x1c7   :  { %v540_v56 = vrot.slane %v539_v53, 1  ;;  %v546_v57 = vrot.slane %v545_v54, 1 }
 0x1c9   :  { %v541_v59 = vadd.f32 %v540_v56, %v539_v53  ;;  %v547_v44 = vadd.f32 %v546_v57, %v545_v54 }
 0x1cb   :  { %v555_v60 = vadd.f32 %v554_v58, %v541_v59  ;;  %v556_v45 = vadd.f32 %v554_v58, %v547_v44 }
 0x1cd   :  { %v684_v61 = vmul.f32 -1.442695, %v555_v60  ;;  %v685_v62 = vmul.f32 -1.442695, %v556_v45 }
 0x1cf   :  { %692 = vpow2.f32 %v684_v61 }
 0x1d0   :  { %694 = vpow2.f32 %v685_v62 }
 0x1d5   :  { %v693_v63 = vpop.eup %692 }
 0x1d6   :  { %v695_v0 = vpop.eup %694  ;;  %v563_v1 = vadd.f32 1.0, %v693_v63 }
 0x1d7   :  { %v564_v3 = vadd.f32 1.0, %v695_v0 }
 0x1d8   :  { %696 = vrcp.f32 %v563_v1  ;;  %vm570_vm1 = vweird.f32 %v563_v1  ;;  %v576_v15 = vand.u32 2147483648, %v563_v1  ;;  %v574_v17 = vand.u32 2147483647, %v563_v1 }
 0x1d9   :  { %698 = vrcp.f32 %v564_v3  ;;  %v591_v11 = vand.u32 2147483648, %v564_v3  ;;  %v589_v13 = vand.u32 2147483647, %v564_v3  ;;  %vm585_vm3 = vweird.f32 %v564_v3 }
 0x1da   :  { %v577_v22 = vor.u32 1.1754944e-38, %v576_v15  ;;  %vm575_vm7 = vcmp.eq.f32.partialorder %v574_v17, 8.507059e+37 }
 0x1db   :  { %v592_v19 = vor.u32 1.1754944e-38, %v591_v11  ;;  %vm590_vm5 = vcmp.eq.f32.partialorder %v589_v13, 8.507059e+37 }
 0x1de   :  { %v697_v4 = vpop.eup %696 }
 0x1df   :  { %v699_v5 = vpop.eup %698  ;;  %v566_v6 = vmul.f32 %v697_v4, %v563_v1  ;;  %vm571_vm15 = vweird.f32 %v697_v4 }
 0x1e0   :  { %v581_v7 = vmul.f32 %v699_v5, %v564_v3  ;;  %vm586_vm0 = vweird.f32 %v699_v5  ;;  %vm954_vm2 = vmor %vm570_vm1, %vm571_vm15 }
 0x1e1   :  { %v567_v8 = vsub.f32 1.0, %v566_v6  ;;  %vm587_vm4 = vmor %vm585_vm3, %vm586_vm0 }
 0x1e2   :  { %v582_v9 = vsub.f32 1.0, %v581_v7 }
 0x1e3   :  { %v568_v10 = vmul.f32 %v697_v4, %v567_v8 }
 0x1e4   :  { %v583_v12 = vmul.f32 %v699_v5, %v582_v9 }
 0x1e5   :  { %v569_v14 = vadd.f32 %v697_v4, %v568_v10 }
 0x1e6   :  { %v584_v18 = vadd.f32 %v699_v5, %v583_v12 }
 0x1e7   :  { %v573_v20 = vsel %vm954_vm2, %v697_v4, %v569_v14 }
 0x1e8   :  { %v588_v21 = vsel %vm587_vm4, %v699_v5, %v584_v18  ;;  %v578_v25 = vsel %vm575_vm7, %v577_v22, %v573_v20 }
 0x1e9   :  { %v593_v23 = vsel %vm590_vm5, %v592_v19, %v588_v21 }
 0x1ea   :  { %v597_v24 = vrot.slane %v593_v23, 7 }
 0x1ec   :  { %v599_v26 = vsel %vm598_vm6, %v578_v25, %v597_v24 }
 0x1ed   :  { %605 = vst.msk [vmem:[#allocation3] sm:$0x3] %vm603_vm8, %v599_v26 }
 0x1ee   :  { %616 = dma.vmem_to_hbm [thread:$0]  %s612_s25, 32, %s614_s27, [#allocation4]  }
 0x1ef   :  { %724 = dma.done.wait [#allocation4], 32  }
 0x1f0   :  { %725 = vsyncadd [#allocation4], 4294967264 }
 0x1f1   :  { %621 = vsyncpa [#allocation4], 1 }

</bundles_post_ra>
